<compile_context>
chip_gen: v5e
topology: v5e:2x2
jax: 0.10.0
libtpu: 0.0.40
codegen_flags: <defaults>
</compile_context>

<pallas_src>
import jax
import jax.numpy as jnp
from jax.experimental import pallas as pl
from jax.experimental.pallas import tpu as pltpu

_LANE = 128      # lane width (last dim)
_SUBLANE = 8     # sublane granularity (second-last dim)


def _round_up(n, m):
    return ((n + m - 1) // m) * m


def _cdiv(a, b):
    return (a + b - 1) // b


def _device_info():
    """Returns (is_v7x, tensorcores_per_chip, physical_vmem_bytes_per_core)."""
    kind = ""
    try:
        kind = (getattr(jax.devices()[0], "device_kind", "") or "").lower()
    except Exception:
        pass
    is_v7 = "v7" in kind
    vmem_phys = (64 << 20) if is_v7 else (128 << 20)
    try:
        info = pltpu.get_tpu_info()
        vmem_phys = int(getattr(info, "vmem_capacity_bytes", vmem_phys))
    except Exception:
        pass
    num_tc = 2 if is_v7 else 1
    return is_v7, num_tc, vmem_phys


def _mlp_kernel(x_ref, w1_ref, b1_ref, w2_ref, b2_ref, o_ref, acc_ref):
    """One (batch_tile, hidden_tile) grid step of fc2(relu(fc1(x)))."""
    h_idx = pl.program_id(1)

    @pl.when(h_idx == 0)
    def _init():
        acc_ref[...] = jnp.zeros_like(acc_ref)

    # Cast x to the MXU dtype *inside* the kernel; HBM only carries the
    # caller's native activations (no wrapper-side cast + re-read).
    x = x_ref[...].astype(w1_ref.dtype)

    # fc1 (MXU, f32 accumulation) + bias + ReLU on this hidden tile.
    h = jnp.dot(x, w1_ref[...], preferred_element_type=jnp.float32)
    h = jnp.maximum(h + b1_ref[...], 0.0)

    # fc2 partial product for this hidden tile, accumulated in f32 VMEM.
    acc_ref[...] += jnp.dot(h.astype(w2_ref.dtype), w2_ref[...],
                            preferred_element_type=jnp.float32)

    @pl.when(h_idx == pl.num_programs(1) - 1)
    def _finalize():
        o_ref[...] = (acc_ref[...] + b2_ref[...]).astype(o_ref.dtype)


def prepare_params(w1, b1, w2, b2, *, compute_dtype=None, lane_multiple=_LANE):
    """One-time prep of PyTorch nn.Linear params (weight [out, in], bias [out]).

    - Transposes weights to [in, out] layout for the kernel's dots.
    - Pads hidden / output dims to lane-dense multiples (default 128; pass
      lane_multiple=256 for >=256 dims on v6e/v7x to fully feed the 256x256 MXU).
    - input_dim (K of fc1) is left UNPADDED so x never needs a wrapper-side
      pad (block_shape == full array dim is legal for that axis).
    """
    hidden_dim, input_dim = w1.shape
    output_dim, hidden_dim2 = w2.shape
    assert hidden_dim == hidden_dim2
    if compute_dtype is None:
        compute_dtype = w1.dtype

    h_p = _round_up(hidden_dim, lane_multiple)
    d_out_p = _round_up(output_dim, lane_multiple)

    w1_t = jnp.pad(jnp.transpose(w1).astype(compute_dtype),
                   ((0, 0), (0, h_p - hidden_dim)))                      # [in, h_p]
    w2_t = jnp.pad(jnp.transpose(w2).astype(compute_dtype),
                   ((0, h_p - hidden_dim), (0, d_out_p - output_dim)))   # [h_p, out_p]
    b1_p = jnp.pad(b1.astype(jnp.float32), (0, h_p - hidden_dim)).reshape(1, h_p)
    b2_p = jnp.pad(b2.astype(jnp.float32), (0, d_out_p - output_dim)).reshape(1, d_out_p)

    return dict(w1=w1_t, b1=b1_p, w2=w2_t, b2=b2_p,
                input_dim=input_dim, hidden_dim=hidden_dim,
                output_dim=output_dim, compute_dtype=compute_dtype)


def simple_classifier_forward(x, params, *, batch_tile=512, hidden_tile=None,
                              out_dtype=None, return_padded=False):
    """fc2(relu(fc1(x))) with pre-prepared params.  x: [batch, input_dim]."""
    batch, input_dim = x.shape
    assert input_dim == params["input_dim"]

    w1, b1, w2, b2 = params["w1"], params["b1"], params["w2"], params["b2"]
    h_p = w1.shape[1]
    d_out_p = w2.shape[1]
    output_dim = params["output_dim"]
    if out_dtype is None:
        out_dtype = x.dtype

    _, num_tc, vmem_phys = _device_info()

    # ---- batch tiling: adaptive tile count, no full-extra-tile rounding ----
    batch_p8 = _round_up(batch, _SUBLANE)
    n_bt = max(1, _cdiv(batch_p8, max(_SUBLANE, batch_tile)))
    if num_tc > 1 and batch_p8 >= 2 * _SUBLANE:
        n_bt = max(n_bt, num_tc)            # keep both v7x TensorCores busy
    n_bt = max(1, min(n_bt, batch_p8 // _SUBLANE))
    bt = _round_up(_cdiv(batch_p8, n_bt), _SUBLANE)
    batch_p = bt * n_bt

    # ---- hidden tiling: bound weight tiles + live f32 intermediate --------
    w_bytes = jnp.dtype(params["compute_dtype"]).itemsize
    weight_budget = max(vmem_phys // 3, 16 << 20)

    def _fits(ht):
        weight_tiles = (input_dim * ht + ht * d_out_p) * w_bytes * 2  # dbl-buffered
        live_inter = bt * ht * 4                                      # f32 h slab
        return weight_tiles + live_inter <= weight_budget

    if hidden_tile is None:
        m = h_p // _LANE
        h_t = _LANE
        for d in range(1, m + 1):
            if m % d == 0 and _fits(_LANE * d):
                h_t = _LANE * d
    else:
        h_t = hidden_tile
        assert h_p % h_t == 0 and h_t % _LANE == 0
    n_h = h_p // h_t
    # TODO(synk): if input_dim itself grows beyond a few K, also tile K of fc1
    # with a second f32 accumulator for the hidden activation.

    # ---- VMEM budget from the actual footprint, per-generation ceiling ----
    x_bytes = jnp.dtype(x.dtype).itemsize
    o_bytes = jnp.dtype(out_dtype).itemsize
    footprint = (
        2 * bt * input_dim * x_bytes                          # x tile (2-buf)
        + 2 * (input_dim * h_t + h_t * d_out_p) * w_bytes     # weight tiles
        + 2 * (h_t + d_out_p) * 4                             # bias tiles (f32)
        + 2 * bt * d_out_p * o_bytes                          # output tile
        + bt * d_out_p * 4                                    # f32 accumulator
        + bt * h_t * 4                                        # live f32 h
    )
    ceiling = int(vmem_phys * 0.78)          # ~48-50 MiB on v7x, ~100 MiB on v5e/v6e
    vmem_limit = max(min(int(footprint * 1.5) + (8 << 20), ceiling), 32 << 20)

    # Single-buffer weights/biases only when their index_map is constant
    # (n_h == 1) and they are big enough for the saving to matter.
    weight_block_bytes = (input_dim * h_t + h_t * d_out_p) * w_bytes
    single_buffer_weights = (n_h == 1) and (weight_block_bytes > (8 << 20))
    w_mode = dict(pipeline_mode=pl.Buffered(1)) if single_buffer_weights else {}

    # Only pad x when the batch genuinely needs rounding to the tile grid.
    x_in = x
    if batch_p != batch:
        x_in = jnp.pad(x, ((0, batch_p - batch), (0, 0)))

    out_padded = pl.pallas_call(
        _mlp_kernel,
        out_shape=jax.ShapeDtypeStruct((batch_p, d_out_p), out_dtype),
        grid=(n_bt, n_h),
        in_specs=[
            pl.BlockSpec((bt, input_dim), lambda i, j: (i, 0)),        # x
            pl.BlockSpec((input_dim, h_t), lambda i, j: (0, j), **w_mode),  # w1
            pl.BlockSpec((1, h_t), lambda i, j: (0, j), **w_mode),          # b1
            pl.BlockSpec((h_t, d_out_p), lambda i, j: (j, 0), **w_mode),    # w2
            pl.BlockSpec((1, d_out_p), lambda i, j: (0, 0), **w_mode),      # b2
        ],
        out_specs=pl.BlockSpec((bt, d_out_p), lambda i, j: (i, 0)),
        scratch_shapes=[pltpu.VMEM((bt, d_out_p), jnp.float32)],
        compiler_params=pltpu.CompilerParams(
            dimension_semantics=("parallel", "arbitrary"),
            vmem_limit_bytes=vmem_limit),
    )(x_in, w1, b1, w2, b2)

    if return_padded:
        return out_padded                    # lane-dense [batch_p, d_out_p] slab
    if batch_p != batch or d_out_p != output_dim:
        return out_padded[:batch, :output_dim]
    return out_padded


if __name__ == "__main__":
    # Small, deterministic config consistent with the module's __init__.
    batch, input_dim, hidden_dim, output_dim = 8, 32, 64, 16

    key = jax.random.PRNGKey(0)
    kx, k1, k2, k3, k4 = jax.random.split(key, 5)

    x = jax.random.normal(kx, (batch, input_dim), dtype=jnp.float32)
    # PyTorch nn.Linear layout: weight [out, in], bias [out].
    w1 = jax.random.normal(k1, (hidden_dim, input_dim), dtype=jnp.float32) * 0.1
    b1 = jax.random.normal(k2, (hidden_dim,), dtype=jnp.float32) * 0.1
    w2 = jax.random.normal(k3, (output_dim, hidden_dim), dtype=jnp.float32) * 0.1
    b2 = jax.random.normal(k4, (output_dim,), dtype=jnp.float32) * 0.1

    ref = jnp.maximum(x @ w1.T + b1, 0.0) @ w2.T + b2

    # f32 path: exact-semantics check (padded lanes stay exactly zero).
    params_f32 = prepare_params(w1, b1, w2, b2)
    out = jax.block_until_ready(simple_classifier_forward(x, params_f32))
    assert out.shape == (batch, output_dim)
    assert jnp.allclose(out, ref, atol=1e-5, rtol=1e-5)

    # bf16 fast path: native MXU dtype, f32 accumulation; loose tolerance.
    params_bf16 = prepare_params(w1, b1, w2, b2, compute_dtype=jnp.bfloat16)
    out_bf16 = jax.block_until_ready(simple_classifier_forward(x, params_bf16))
    assert out_bf16.shape == (batch, output_dim)
    assert jnp.allclose(out_bf16, ref, atol=1e-1, rtol=1e-1)

    # Ragged batch (exercises the tail-aware batch padding path).
    x_tail = x[:5]
    out_tail = jax.block_until_ready(simple_classifier_forward(x_tail, params_f32))
    assert out_tail.shape == (5, output_dim)
    assert jnp.allclose(out_tail, ref[:5], atol=1e-5, rtol=1e-5)

    print("KERNEL_OK")
</pallas_src>

<mosaic_0001>
module attributes {stable_mosaic.version = 11 : i64} {
  func.func @_mlp_kernel(%arg0: i32, %arg1: i32, %arg2: memref<8x32xf32, #tpu.memory_space<vmem>>, %arg3: memref<32x128xf32, #tpu.memory_space<vmem>>, %arg4: memref<1x128xf32, #tpu.memory_space<vmem>>, %arg5: memref<128x128xf32, #tpu.memory_space<vmem>>, %arg6: memref<1x128xf32, #tpu.memory_space<vmem>>, %arg7: memref<8x128xf32, #tpu.memory_space<vmem>>, %arg8: memref<8x128xf32, #tpu.memory_space<vmem>>) attributes {dimension_semantics = [#tpu.dimension_semantics<parallel>, #tpu.dimension_semantics<arbitrary>], iteration_bounds = array<i64: 1, 1>, scalar_prefetch = 0 : i64, scratch_operands = 1 : i64, tpu.core_type = #tpu.core_type<tc>, window_params = [{transform_indices = @transform_0, window_bounds = array<i64: 8, 32>}, {transform_indices = @transform_1, window_bounds = array<i64: 32, 128>}, {transform_indices = @transform_2, window_bounds = array<i64: 1, 128>}, {transform_indices = @transform_3, window_bounds = array<i64: 128, 128>}, {pipeline_mode = #tpu.pipeline_mode<synchronous>, transform_indices = @transform_4, window_bounds = array<i64: 1, 128>}, {transform_indices = @transform_5, window_bounds = array<i64: 8, 128>}]} {
    %c0_i32 = arith.constant 0 : i32
    %0 = arith.cmpi eq, %arg1, %c0_i32 : i32
    %1 = arith.extui %0 : i1 to i32
    %c0_i32_0 = arith.constant 0 : i32
    %2 = arith.cmpi ne, %1, %c0_i32_0 : i32
    scf.if %2 {
      %cst_16 = arith.constant 0.000000e+00 : f32
      %19 = vector.broadcast %cst_16 : f32 to vector<8x128xf32>
      %c0_17 = arith.constant 0 : index
      %c0_18 = arith.constant 0 : index
      %20 = vector.load %arg8[%c0_17, %c0_18] : memref<8x128xf32, #tpu.memory_space<vmem>>, vector<8x128xf32>
      tpu.vector_store %arg8[%c0_17, %c0_18], %19 {strides = array<i32>} : memref<8x128xf32, #tpu.memory_space<vmem>>, vector<8x128xf32>,
    } else {
    }
    %c0 = arith.constant 0 : index
    %c0_1 = arith.constant 0 : index
    %3 = vector.load %arg2[%c0, %c0_1] : memref<8x32xf32, #tpu.memory_space<vmem>>, vector<8x32xf32>
    %c0_2 = arith.constant 0 : index
    %c0_3 = arith.constant 0 : index
    %4 = vector.load %arg3[%c0_2, %c0_3] : memref<32x128xf32, #tpu.memory_space<vmem>>, vector<32x128xf32>
    %cst = arith.constant dense<0.000000e+00> : vector<8x128xf32>
    %5 = tpu.matmul %3, %4, %cst {dimension_numbers = #tpu.dot_dimension_numbers<[1], [0], [0], [1], [0, 0, 1, 1], [], []>} : vector<8x32xf32>, vector<32x128xf32>, vector<8x128xf32> -> vector<8x128xf32>
    %c0_4 = arith.constant 0 : index
    %c0_5 = arith.constant 0 : index
    %6 = vector.load %arg4[%c0_4, %c0_5] : memref<1x128xf32, #tpu.memory_space<vmem>>, vector<1x128xf32>
    %7 = vector.broadcast %6 : vector<1x128xf32> to vector<8x128xf32>
    %8 = arith.addf %5, %7 : vector<8x128xf32>
    %cst_6 = arith.constant 0.000000e+00 : f32
    %9 = vector.broadcast %cst_6 : f32 to vector<8x128xf32>
    %10 = arith.maximumf %8, %9 : vector<8x128xf32>
    %c0_7 = arith.constant 0 : index
    %c0_8 = arith.constant 0 : index
    %11 = vector.load %arg8[%c0_7, %c0_8] : memref<8x128xf32, #tpu.memory_space<vmem>>, vector<8x128xf32>
    %c0_9 = arith.constant 0 : index
    %c0_10 = arith.constant 0 : index
    %12 = vector.load %arg5[%c0_9, %c0_10] : memref<128x128xf32, #tpu.memory_space<vmem>>, vector<128x128xf32>
    %cst_11 = arith.constant dense<0.000000e+00> : vector<8x128xf32>
    %13 = tpu.matmul %10, %12, %cst_11 {dimension_numbers = #tpu.dot_dimension_numbers<[1], [0], [0], [1], [0, 0, 1, 1], [], []>} : vector<8x128xf32>, vector<128x128xf32>, vector<8x128xf32> -> vector<8x128xf32>
    %14 = arith.addf %11, %13 : vector<8x128xf32>
    %c0_12 = arith.constant 0 : index
    %c0_13 = arith.constant 0 : index
    %15 = vector.load %arg8[%c0_12, %c0_13] : memref<8x128xf32, #tpu.memory_space<vmem>>, vector<8x128xf32>
    tpu.vector_store %arg8[%c0_12, %c0_13], %14 {strides = array<i32>} : memref<8x128xf32, #tpu.memory_space<vmem>>, vector<8x128xf32>,
    %c0_i32_14 = arith.constant 0 : i32
    %16 = arith.cmpi eq, %arg1, %c0_i32_14 : i32
    %17 = arith.extui %16 : i1 to i32
    %c0_i32_15 = arith.constant 0 : i32
    %18 = arith.cmpi ne, %17, %c0_i32_15 : i32
    scf.if %18 {
      %c0_16 = arith.constant 0 : index
      %c0_17 = arith.constant 0 : index
      %19 = vector.load %arg8[%c0_16, %c0_17] : memref<8x128xf32, #tpu.memory_space<vmem>>, vector<8x128xf32>
      %c0_18 = arith.constant 0 : index
      %c0_19 = arith.constant 0 : index
      %20 = vector.load %arg6[%c0_18, %c0_19] : memref<1x128xf32, #tpu.memory_space<vmem>>, vector<1x128xf32>
      %21 = vector.broadcast %20 : vector<1x128xf32> to vector<8x128xf32>
      %22 = arith.addf %19, %21 : vector<8x128xf32>
      %c0_20 = arith.constant 0 : index
      %c0_21 = arith.constant 0 : index
      %23 = vector.load %arg7[%c0_20, %c0_21] : memref<8x128xf32, #tpu.memory_space<vmem>>, vector<8x128xf32>
      tpu.vector_store %arg7[%c0_20, %c0_21], %22 {strides = array<i32>} : memref<8x128xf32, #tpu.memory_space<vmem>>, vector<8x128xf32>,
    } else {
    }
    return
  }
  func.func @transform_0(%arg0: i32, %arg1: i32) -> (i32, i32) {
    %c0_i32 = arith.constant 0 : i32
    %c0_i32_0 = arith.constant 0 : i32
    return %arg0, %c0_i32 : i32, i32
  }
  func.func @transform_1(%arg0: i32, %arg1: i32) -> (i32, i32) {
    %c0_i32 = arith.constant 0 : i32
    %c0_i32_0 = arith.constant 0 : i32
    return %c0_i32, %arg1 : i32, i32
  }
  func.func @transform_2(%arg0: i32, %arg1: i32) -> (i32, i32) {
    %c0_i32 = arith.constant 0 : i32
    %c0_i32_0 = arith.constant 0 : i32
    return %c0_i32, %arg1 : i32, i32
  }
  func.func @transform_3(%arg0: i32, %arg1: i32) -> (i32, i32) {
    %c0_i32 = arith.constant 0 : i32
    %c0_i32_0 = arith.constant 0 : i32
    return %arg1, %c0_i32 : i32, i32
  }
  func.func @transform_4(%arg0: i32, %arg1: i32) -> (i32, i32) {
    %c0_i32 = arith.constant 0 : i32
    %c0_i32_0 = arith.constant 0 : i32
    %c0_i32_1 = arith.constant 0 : i32
    return %c0_i32, %c0_i32_0 : i32, i32
  }
  func.func @transform_5(%arg0: i32, %arg1: i32) -> (i32, i32) {
    %c0_i32 = arith.constant 0 : i32
    %c0_i32_0 = arith.constant 0 : i32
    return %arg0, %c0_i32 : i32, i32
  }
}

</mosaic_0001>

<bundles_post_ra>
// kernel: tpu_custom_call.1
= control target key start
LH: loop header
LB: loop body
LE: loop exit
PB: predicated region body
PF: predicated region fallthrough
CT: control target
= control target key end

     0   :  { %10 = vsyncpa [#allocation4], 0  ;;  %s337_s0 = inlined_call_operand.hbm [shape: f32[8,32], index: 0, kind: input, shape index: {}]   ;;  %s338_s1 = inlined_call_operand.hbm [shape: f32[32,128], index: 1, kind: input, shape index: {}]   ;;  %s339_s2 = inlined_call_operand.vmem [shape: f32[1,128], index: 2, kind: input, shape index: {}]   ;;  %s340_s3 = inlined_call_operand.hbm [shape: f32[128,128], index: 3, kind: input, shape index: {}]   ;;  %s341_s4 = inlined_call_operand.vmem [shape: f32[1,128], index: 4, kind: input, shape index: {}]   ;;  %s342_s5 = inlined_call_operand.hbm [shape: f32[8,128], index: 5, kind: output, shape index: {}]  }
   0x1   :  { %11 = vsyncpa [#allocation7], 0  ;;  %s28_s20 = sshll.u32 %s338_s1, 4  ;;  %s29_s20 = int_to_ptr.hbm [resolvable:$true] %s28_s20 }
   0x2   :  { %12 = vsyncpa [#allocation5], 0  ;;  %s283_s21 = smov [#allocation6]   ;;  %s18_s25 = sshll.u32 %s337_s0, 4  ;;  %s19_s25 = int_to_ptr.hbm [resolvable:$true] %s18_s25 }
   0x3   :  { %s30_s22 = sshll.u32 %s283_s21, 4  ;;  %s284_s26 = smov 128   ;;  %s31_s22 = int_to_ptr.vmem [resolvable:$true] %s30_s22 }
   0x4   :  { %s285_s27 = smov 8   ;;  %s286_s28 = smov [#allocation3]  }
   0x5   :  { %36 = dma.hbm_to_vmem [thread:$0]  %s29_s20, 512, %s31_s22, [#allocation7], %s284_s26, %s284_s26, %s285_s27  }
   0x6   :  { %s20_s29 = sshll.u32 %s286_s28, 4  ;;  %s43_s7 = sshll.u32 %s340_s3, 4  ;;  %s21_s29 = int_to_ptr.vmem [resolvable:$true] %s20_s29  ;;  %s44_s7 = int_to_ptr.hbm [resolvable:$true] %s43_s7 }
   0x7   :  { %23 = dma.hbm_to_vmem [thread:$0]  %s19_s25, 128, %s21_s29, [#allocation4]  }
   0x8   :  { %s287_s1 = smov [#allocation8]  }
   0x9   :  { %s45_s8 = sshll.u32 %s287_s1, 4  ;;  %s46_s8 = int_to_ptr.vmem [resolvable:$true] %s45_s8 }
   0xa   :  { %51 = dma.hbm_to_vmem [thread:$0]  %s44_s7, 2048, %s46_s8, [#allocation7], %s284_s26, %s284_s26, %s285_s27  }
   0xb   :  { %277 = dma.done.wait [#allocation4], 128  }
   0xc   :  { %278 = vsyncadd [#allocation4], 4294967168 }
   0xd   :  { %279 = dma.done.wait [#allocation7], 2560  }
   0xe   :  { %280 = vsyncadd [#allocation7], 4294964736  ;;  %v75_v0 = vld [vmem:[#allocation6 + $0x18] sm:$0xff]  ;;  %v74_v1 = vld [vmem:[#allocation6 + $0x10] sm:$0xff]  ;;  %vm80_vm0 = vcmask 261120   ;;  %s288_s11 = smov [#allocation9]  }
   0xf   :  { %96 = vmatpush.msra.mxu0 %v75_v0  ;;  %v121_v2 = vld [vmem:[#allocation8 + $0x78] sm:$0xff]  ;;  %v73_v3 = vld [vmem:[#allocation6 + $0x8] sm:$0xff]  ;;  %v120_v4 = vld [vmem:[#allocation8 + $0x70] sm:$0xff]  ;;  %s159_s12 = sshll.u32 %s288_s11, 4  ;;  %s161_s15 = sshll.u32 %s342_s5, 4  ;;  %s160_s12 = int_to_ptr.vmem [resolvable:$true] %s159_s12  ;;  %s162_s15 = int_to_ptr.hbm [resolvable:$true] %s161_s15 }
  0x10   :  { %122 = vmatpush.msra.mxu1 %v121_v2  ;;  %v119_v5 = vld [vmem:[#allocation8 + $0x68] sm:$0xff]  ;;  %v72_v6 = vld [vmem:[#allocation6] sm:$0xff]  ;;  %v71_v7 = vld [vmem:[#allocation3] sm:$0xff] }
  0x11   :  { %97 = vmatpush.msra.mxu0 %v74_v1  ;;  %v118_v8 = vld [vmem:[#allocation8 + $0x60] sm:$0xff]  ;;  %v117_v9 = vld [vmem:[#allocation8 + $0x58] sm:$0xff]  ;;  %v116_v10 = vld [vmem:[#allocation8 + $0x50] sm:$0xff] }
  0x12   :  { %123 = vmatpush.msra.mxu1 %v120_v4  ;;  %v115_v11 = vld [vmem:[#allocation8 + $0x48] sm:$0xff]  ;;  %v114_v12 = vld [vmem:[#allocation8 + $0x40] sm:$0xff]  ;;  %v113_v13 = vld [vmem:[#allocation8 + $0x38] sm:$0xff] }
  0x13   :  { %98 = vmatpush.msra.mxu0 %v73_v3  ;;  %v112_v14 = vld [vmem:[#allocation8 + $0x30] sm:$0xff]  ;;  %v111_v15 = vld [vmem:[#allocation8 + $0x28] sm:$0xff]  ;;  %v110_v16 = vld [vmem:[#allocation8 + $0x20] sm:$0xff] }
  0x14   :  { %124 = vmatpush.msra.mxu1 %v119_v5  ;;  %v109_v17 = vld [vmem:[#allocation8 + $0x18] sm:$0xff]  ;;  %v108_v18 = vld [vmem:[#allocation8 + $0x10] sm:$0xff]  ;;  %v107_v19 = vld [vmem:[#allocation8 + $0x8] sm:$0xff] }
  0x15   :  { %99 = vmatpush.msra.mxu0 %v72_v6  ;;  %v106_v20 = vld [vmem:[#allocation8] sm:$0xff]  ;;  %v179_v21 = vld [vmem:[%s339_s2] ss:$0 sm:$0xff] }
  0x16   :  { %172 = vmatmul.msk.f32.vlgmr.msra.gmra.mxu0 %vm80_vm0, %v71_v7  ;;  %125 = vmatpush.msra.mxu1 %v118_v8  ;;  %v180_v25 = vld [vmem:[%s341_s4] ss:$0 sm:$0xff] }
  0x18   :  { %126 = vmatpush.msra.mxu1 %v117_v9 }
  0x1a   :  { %127 = vmatpush.msra.mxu1 %v116_v10 }
  0x1c   :  { %128 = vmatpush.msra.mxu1 %v115_v11 }
  0x1e   :  { %129 = vmatpush.msra.mxu1 %v114_v12 }
  0x20   :  { %130 = vmatpush.msra.mxu1 %v113_v13 }
  0x22   :  { %131 = vmatpush.msra.mxu1 %v112_v14 }
  0x24   :  { %132 = vmatpush.msra.mxu1 %v111_v15 }
  0x26   :  { %133 = vmatpush.msra.mxu1 %v110_v16 }
  0x28   :  { %134 = vmatpush.msra.mxu1 %v109_v17 }
  0x2a   :  { %135 = vmatpush.msra.mxu1 %v108_v18 }
  0x2c   :  { %136 = vmatpush.msra.mxu1 %v107_v19 }
  0x2e   :  { %137 = vmatpush.msra.mxu1 %v106_v20 }
  0x93   :  { %v101_v22 = vpop.f32.mrf.mxu0 }
  0x94   :  { %v102_v23 = vadd.f32 %v179_v21, %v101_v22 }
  0x96   :  { %v104_v24 = vmax.f32 %v102_v23, 0.0 }
  0x98   :  { %138 = vmatmul.f32.vlgmr.msra.gmra.mxu1 %v104_v24 }
 0x115   :  { %v139_v26 = vpop.f32.mrf.mxu1 }
 0x116   :  { %v152_v27 = vadd.f32 %v180_v25, %v139_v26 }
 0x118   :  { %153 = vst [vmem:[#allocation9] sm:$0xff] %v152_v27 }
 0x119   :  { %164 = dma.vmem_to_hbm [thread:$0]  %s160_s12, 128, %s162_s15, [#allocation5]  }
 0x11a   :  { %281 = dma.done.wait [#allocation5], 128  }
 0x11b   :  { %282 = vsyncadd [#allocation5], 4294967168 }
 0x11c   :  { %169 = vsyncpa [#allocation4], 1 }
 0x11d   :  { %170 = vsyncpa [#allocation7], 1 }
 0x11e   :  { %171 = vsyncpa [#allocation5], 1 }

</bundles_post_ra>
